<compile_context>
chip_gen: v7x
topology: tpu7x:2x2x1
jax: 0.10.0
libtpu: 0.0.40
codegen_flags: <defaults>
</compile_context>

<pallas_src>
import jax
import jax.numpy as jnp
import numpy as np
from jax.experimental import pallas as pl
from jax.experimental.pallas import tpu as pltpu


def _compound_kernel(frame_ref, obs_ref, w_ref, bias_ref, sel_ref, out_ref):
    """One batch tile: fused matmul over all primitives + MXU block-sum reduce."""
    frame = frame_ref[0].astype(jnp.float32)                 # SMEM scalar

    # Combine the two bias vectors once per tile: [P*A].
    eff_bias = bias_ref[0] + frame * bias_ref[1]

    # Single MXU pass covering every primitive: [TB, D] @ [D, P*A] -> [TB, P*A].
    pre = jnp.dot(obs_ref[...], w_ref[...], preferred_element_type=jnp.float32)
    act = jnp.tanh(pre + eff_bias[None, :])                  # [TB, P*A]

    # Reduce over the P lane-groups with a second (tiny) MXU matmul against the
    # constant selector S = tile(eye(A), (P, 1)):  [TB, P*A] @ [P*A, A].
    out_ref[...] = jnp.dot(
        act, sel_ref[...], preferred_element_type=jnp.float32
    ).astype(out_ref.dtype)


def make_compound_primitive(W, b, c, *, batch_tile=128):
    """Module 'init': pack parameters once, return a jitted forward(obs, frame_nb).

    W: [P, D, A], b/c: [P, A].  forward(obs [B, D], frame_nb int) -> [B, A].
    """
    P, D, A = W.shape
    PA = P * A

    # One-off parameter repacking (NOT in the per-call hot path).
    W_fused = jnp.transpose(W, (1, 0, 2)).reshape(D, PA)               # [D, P*A]
    bias_packed = jnp.stack([b.reshape(PA), c.reshape(PA)])            # [2, P*A]
    selector = jnp.tile(jnp.eye(A, dtype=jnp.float32), (P, 1))         # [P*A, A]

    @jax.jit
    def forward(obs, frame_nb):
        B = obs.shape[0]
        tb = min(batch_tile, B)                      # static under jit
        n_blocks = pl.cdiv(B, tb)
        b_pad = n_blocks * tb

        obs_in = obs
        if b_pad != B:                               # pad batch to tile multiple
            obs_in = jnp.pad(obs, ((0, b_pad - B), (0, 0)))

        frame_arr = jnp.reshape(jnp.asarray(frame_nb, dtype=jnp.int32), (1,))

        grid_spec = pltpu.PrefetchScalarGridSpec(
            num_scalar_prefetch=1,                   # frame_nb -> SMEM
            grid=(n_blocks,),
            in_specs=[
                pl.BlockSpec((tb, D), lambda i, frame: (i, 0)),   # obs tile
                pl.BlockSpec((D, PA), lambda i, frame: (0, 0)),   # fused weights
                pl.BlockSpec((2, PA), lambda i, frame: (0, 0)),   # packed biases
                pl.BlockSpec((PA, A), lambda i, frame: (0, 0)),   # selector
            ],
            out_specs=pl.BlockSpec((tb, A), lambda i, frame: (i, 0)),
        )

        out = pl.pallas_call(
            _compound_kernel,
            out_shape=jax.ShapeDtypeStruct((b_pad, A), jnp.float32),
            grid_spec=grid_spec,
            compiler_params=pltpu.CompilerParams(
                dimension_semantics=("parallel",),   # shards across TCs on v7x
            ),
        )(frame_arr, obs_in, W_fused, bias_packed, selector)

        return out[:B] if b_pad != B else out

    return forward


def compound_primitive_reference(obs, frame_nb, W, b, c):
    """Plain-JAX reference mirroring the PyTorch loop: act = p0(...); act += p_i(...)."""
    frame = jnp.float32(frame_nb)
    act = jnp.tanh(obs @ W[0] + b[0] + frame * c[0])
    for i in range(1, W.shape[0]):
        act = act + jnp.tanh(obs @ W[i] + b[i] + frame * c[i])
    return act


if __name__ == "__main__":
    key = jax.random.PRNGKey(0)
    k_obs, k_w, k_b, k_c = jax.random.split(key, 4)

    # Small shapes consistent with the module: batch=2, obs_dim=32,
    # action_dim=8, 3 sub-primitives in the compound.
    B, D, A, P = 2, 32, 8, 3
    frame_nb = 5

    obs = jax.random.normal(k_obs, (B, D), dtype=jnp.float32)
    W = jax.random.normal(k_w, (P, D, A), dtype=jnp.float32) * 0.1
    b = jax.random.normal(k_b, (P, A), dtype=jnp.float32) * 0.1
    c = jax.random.normal(k_c, (P, A), dtype=jnp.float32) * 0.01

    # "Module init": pack parameters once.
    forward = make_compound_primitive(W, b, c)

    act = forward(obs, frame_nb)
    act = jax.block_until_ready(act)

    ref = compound_primitive_reference(obs, frame_nb, W, b, c)
    np.testing.assert_allclose(np.asarray(act), np.asarray(ref), rtol=1e-5, atol=1e-5)

    print("KERNEL_OK")
</pallas_src>

<mosaic_0001>
module attributes {stable_mosaic.version = 11 : i64} {
  func.func @_compound_kernel(%arg0: i32, %arg1: memref<1xi32, #tpu.memory_space<smem>>, %arg2: memref<2x32xf32, #tpu.memory_space<vmem>>, %arg3: memref<32x24xf32, #tpu.memory_space<vmem>>, %arg4: memref<2x24xf32, #tpu.memory_space<vmem>>, %arg5: memref<24x8xf32, #tpu.memory_space<vmem>>, %arg6: memref<2x8xf32, #tpu.memory_space<vmem>>) attributes {dimension_semantics = [#tpu.dimension_semantics<parallel>], iteration_bounds = array<i64: 1>, scalar_prefetch = 1 : i64, scratch_operands = 0 : i64, tpu.core_type = #tpu.core_type<tc>, window_params = [{transform_indices = @transform_0, window_bounds = array<i64: 2, 32>}, {pipeline_mode = #tpu.pipeline_mode<synchronous>, transform_indices = @transform_1, window_bounds = array<i64: 32, 24>}, {pipeline_mode = #tpu.pipeline_mode<synchronous>, transform_indices = @transform_2, window_bounds = array<i64: 2, 24>}, {pipeline_mode = #tpu.pipeline_mode<synchronous>, transform_indices = @transform_3, window_bounds = array<i64: 24, 8>}, {transform_indices = @transform_4, window_bounds = array<i64: 2, 8>}]} {
    %c0 = arith.constant 0 : index
    %0 = memref.load %arg1[%c0] : memref<1xi32, #tpu.memory_space<smem>>
    %1 = arith.sitofp %0 : i32 to f32
    %c0_0 = arith.constant 0 : index
    %c0_1 = arith.constant 0 : index
    %2 = vector.load %arg4[%c0_0, %c0_1] : memref<2x24xf32, #tpu.memory_space<vmem>>, vector<1x24xf32>
    %3 = vector.shape_cast %2 : vector<1x24xf32> to vector<24xf32>
    %c1 = arith.constant 1 : index
    %c0_2 = arith.constant 0 : index
    %4 = vector.load %arg4[%c1, %c0_2] : memref<2x24xf32, #tpu.memory_space<vmem>>, vector<1x24xf32>
    %5 = vector.shape_cast %4 : vector<1x24xf32> to vector<24xf32>
    %6 = vector.broadcast %1 : f32 to vector<24xf32>
    %7 = arith.mulf %6, %5 : vector<24xf32>
    %8 = arith.addf %3, %7 : vector<24xf32>
    %c0_3 = arith.constant 0 : index
    %c0_4 = arith.constant 0 : index
    %9 = vector.load %arg2[%c0_3, %c0_4] : memref<2x32xf32, #tpu.memory_space<vmem>>, vector<2x32xf32>
    %c0_5 = arith.constant 0 : index
    %c0_6 = arith.constant 0 : index
    %10 = vector.load %arg3[%c0_5, %c0_6] : memref<32x24xf32, #tpu.memory_space<vmem>>, vector<32x24xf32>
    %cst = arith.constant dense<0.000000e+00> : vector<2x24xf32>
    %11 = tpu.matmul %9, %10, %cst {dimension_numbers = #tpu.dot_dimension_numbers<[1], [0], [0], [1], [0, 0, 1, 1], [], []>} : vector<2x32xf32>, vector<32x24xf32>, vector<2x24xf32> -> vector<2x24xf32>
    %12 = vector.shape_cast %8 : vector<24xf32> to vector<1x24xf32>
    %13 = vector.broadcast %12 : vector<1x24xf32> to vector<2x24xf32>
    %14 = arith.addf %11, %13 : vector<2x24xf32>
    %15 = math.tanh %14 : vector<2x24xf32>
    %c0_7 = arith.constant 0 : index
    %c0_8 = arith.constant 0 : index
    %16 = vector.load %arg5[%c0_7, %c0_8] : memref<24x8xf32, #tpu.memory_space<vmem>>, vector<24x8xf32>
    %cst_9 = arith.constant dense<0.000000e+00> : vector<2x8xf32>
    %17 = tpu.matmul %15, %16, %cst_9 {dimension_numbers = #tpu.dot_dimension_numbers<[1], [0], [0], [1], [0, 0, 1, 1], [], []>} : vector<2x24xf32>, vector<24x8xf32>, vector<2x8xf32> -> vector<2x8xf32>
    %c0_10 = arith.constant 0 : index
    %c0_11 = arith.constant 0 : index
    %18 = vector.load %arg6[%c0_10, %c0_11] : memref<2x8xf32, #tpu.memory_space<vmem>>, vector<2x8xf32>
    tpu.vector_store %arg6[%c0_10, %c0_11], %17 {strides = array<i32>} : memref<2x8xf32, #tpu.memory_space<vmem>>, vector<2x8xf32>,
    return
  }
  func.func @transform_0(%arg0: i32, %arg1: memref<1xi32, #tpu.memory_space<smem>>) -> (i32, i32) {
    %c0_i32 = arith.constant 0 : i32
    %c0_i32_0 = arith.constant 0 : i32
    return %arg0, %c0_i32 : i32, i32
  }
  func.func @transform_1(%arg0: i32, %arg1: memref<1xi32, #tpu.memory_space<smem>>) -> (i32, i32) {
    %c0_i32 = arith.constant 0 : i32
    %c0_i32_0 = arith.constant 0 : i32
    %c0_i32_1 = arith.constant 0 : i32
    return %c0_i32, %c0_i32_0 : i32, i32
  }
  func.func @transform_2(%arg0: i32, %arg1: memref<1xi32, #tpu.memory_space<smem>>) -> (i32, i32) {
    %c0_i32 = arith.constant 0 : i32
    %c0_i32_0 = arith.constant 0 : i32
    %c0_i32_1 = arith.constant 0 : i32
    return %c0_i32, %c0_i32_0 : i32, i32
  }
  func.func @transform_3(%arg0: i32, %arg1: memref<1xi32, #tpu.memory_space<smem>>) -> (i32, i32) {
    %c0_i32 = arith.constant 0 : i32
    %c0_i32_0 = arith.constant 0 : i32
    %c0_i32_1 = arith.constant 0 : i32
    return %c0_i32, %c0_i32_0 : i32, i32
  }
  func.func @transform_4(%arg0: i32, %arg1: memref<1xi32, #tpu.memory_space<smem>>) -> (i32, i32) {
    %c0_i32 = arith.constant 0 : i32
    %c0_i32_0 = arith.constant 0 : i32
    return %arg0, %c0_i32 : i32, i32
  }
}

</mosaic_0001>

<bundles_post_ra>
// kernel: forward.1
= control target key start
LH: loop header
LB: loop body
LE: loop exit
PB: predicated region body
PF: predicated region fallthrough
CT: control target
= control target key end

     0   :  { %11 = vsyncpa [#allocation5], 0  ;;  %s442_s0 = inlined_call_operand.<no memory space> [shape: s32[1], index: 0, kind: input, shape index: {}]   ;;  %s443_s1 = inlined_call_operand.vmem [shape: f32[2,32], index: 1, kind: input, shape index: {}]   ;;  %s444_s2 = inlined_call_operand.hbm [shape: f32[32,24], index: 2, kind: input, shape index: {}]   ;;  %s445_s3 = inlined_call_operand.vmem [shape: f32[2,24], index: 3, kind: input, shape index: {}]   ;;  %s446_s4 = inlined_call_operand.hbm [shape: f32[24,8], index: 4, kind: input, shape index: {}]   ;;  %s447_s5 = inlined_call_operand.hbm [shape: f32[2,8], index: 5, kind: output, shape index: {}]  }
   0x1   :  { %12 = vsyncpa [#allocation8], 0 }
   0x2   :  { %13 = vsyncpa [#allocation6], 0  ;;  %s356_s18 = smov [#allocation4]   ;;  %s284_s22 = scalar_lea.hbm %s444_s2, 512 }
   0x3   :  { %s21_s19 = sshll.u32 %s356_s18, 4  ;;  %p285_p0 = scmp.ne.s32.totalorder %s444_s2, %s284_s22  ;;  %s22_s19 = int_to_ptr.vmem [resolvable:$true] %s21_s19 }
   0x4   :  { %p288_p1 = scmp.lt.u32.totalorder %s284_s22, %s444_s2 }
   0x6   :  { %p290_p2 = pnand %p288_p1, %p285_p0 }
   0x8   :  { %293 = shalt.err (!%p290_p2)
}
   0x9   :  { %s294_s27 = scalar_lea.vmem %s22_s19, 512  ;;  %p299_p4 = scmp.lt.s32.totalorder %s22_s19, %s22_s19 }
   0xa   :  { %p295_p3 = scmp.ne.s32.totalorder %s22_s19, %s294_s27  ;;  %p300_p5 = scmp.lt.s32.totalorder %s294_s27, %s294_s27 }
   0xc   :  { %p301_p6 = por %p300_p5, %p299_p4 }
   0xe   :  { %p302_p7 = pnand %p301_p6, %p295_p3 }
  0x10   :  { %305 = shalt.err (!%p302_p7)
}
  0x11   :  { %s357_s28 = smov 128   ;;  %s358_s29 = smov 8  }
  0x12   :  { %27 = dma.hbm_to_vmem [thread:$0]  %s444_s2, 512, %s22_s19, [#allocation5], %s357_s28, %s357_s28, %s358_s29  }
  0x13   :  { %s359_s7 = smov [#allocation7]   ;;  %s306_s11 = scalar_lea.hbm %s446_s4, 384 }
  0x14   :  { %s35_s8 = sshll.u32 %s359_s7, 4  ;;  %p307_p8 = scmp.ne.s32.totalorder %s446_s4, %s306_s11  ;;  %s36_s8 = int_to_ptr.vmem [resolvable:$true] %s35_s8 }
  0x15   :  { %p310_p9 = scmp.lt.u32.totalorder %s306_s11, %s446_s4 }
  0x17   :  { %p312_p10 = pnand %p310_p9, %p307_p8 }
  0x19   :  { %315 = shalt.err (!%p312_p10)
}
  0x1a   :  { %s316_s16 = scalar_lea.vmem %s36_s8, 384  ;;  %p321_p12 = scmp.lt.s32.totalorder %s36_s8, %s36_s8 }
  0x1b   :  { %p317_p11 = scmp.ne.s32.totalorder %s36_s8, %s316_s16  ;;  %p322_p13 = scmp.lt.s32.totalorder %s316_s16, %s316_s16 }
  0x1d   :  { %p323_p0 = por %p322_p13, %p321_p12 }
  0x1f   :  { %p324_p1 = pnand %p323_p0, %p317_p11 }
  0x21   :  { %327 = shalt.err (!%p324_p1)
}
  0x22   :  { %41 = dma.hbm_to_vmem [thread:$0]  %s446_s4, 384, %s36_s8, [#allocation8], %s357_s28, %s357_s28, %s358_s29  }
  0x23   :  { %350 = dma.done.wait [#allocation5], 512  }
  0x24   :  { %351 = vsyncadd [#allocation5], 4294966784 }
  0x25   :  { %352 = dma.done.wait [#allocation8], 384  }
  0x26   :  { %353 = vsyncadd [#allocation8], 4294966912  ;;  %v360_v0 = vmov 0.0|0.0   ;;  %vm361_vm0 = vmmov 0   ;;  %v362_v1 = vmov 0.0   ;;  %v56_v2 = vld [vmem:[#allocation4] sm:$0xff]  ;;  %s49_s21 = scvt.s32.f32 %s442_s0  ;;  %v60_v13 = vlaneseq }
  0x27   :  { %265 = vmatprep.subr.bf16.mxu0 %v360_v0  ;;  %253 = vmatprep.mubr.msk.f32.mxu0 %vm361_vm0, %v362_v1  ;;  %v57_v3 = vld [vmem:[#allocation4 + $0x8] sm:$0xff]  ;;  %v58_v4 = vld [vmem:[#allocation4 + $0x10] sm:$0xff]  ;;  %v59_v6 = vld [vmem:[#allocation4 + $0x18] sm:$0xff]  ;;  %vm64_vm1 = vcmask 261120   ;;  %vm142_vm2 = vcmask 195584   ;;  %s363_s0 = smov [#allocation9]  }
  0x28   :  { %271 = vmatprep.subr.bf16.mxu1 %v360_v0  ;;  %262 = vmatprep.mubr.msk.f32.mxu1 %vm361_vm0, %v362_v1  ;;  %v266_v5 = vpack.c.bf16 %v57_v3, %v56_v2  ;;  %v269_v7 = vpack.c.bf16 %v59_v6, %v58_v4  ;;  %v55_v8 = vld [vmem:[%s443_s1] sm:$0x3]  ;;  %v140_v10 = vld [vmem:[#allocation7 + $0x8] sm:$0xff]  ;;  %v141_v12 = vld [vmem:[#allocation7 + $0x10] sm:$0xff]  ;;  %v52_v15 = vstv %s49_s21  ;;  %v61_v17 = vshrl.u32 %v60_v13, 7  ;;  %s224_s25 = sshll.u32 %s363_s0, 4  ;;  %s225_s25 = int_to_ptr.vmem [resolvable:$true] %s224_s25 }
  0x29   :  { %v139_v9 = vld [vmem:[#allocation7] sm:$0xff]  ;;  %vm216_vm3 = vcmask 58368   ;;  %s328_s26 = scalar_lea.vmem %s225_s25, 32  ;;  %p333_p3 = scmp.lt.s32.totalorder %s225_s25, %s225_s25 }
  0x2a   :  { %267 = vmatpush3.bf16.msra.mxu0 %v266_v5  ;;  %v272_v11 = vpack.c.bf16 %v140_v10, %v139_v9  ;;  %v51_v14 = vld [vmem:[%s445_s3 + $0x1] sm:$0x1]  ;;  %v50_v18 = vld [vmem:[%s445_s3] sm:$0x1]  ;;  %v62_v20 = vsub.s32 0, %v61_v17  ;;  %p329_p2 = scmp.ne.s32.totalorder %s225_s25, %s328_s26  ;;  %p334_p4 = scmp.lt.s32.totalorder %s328_s26, %s328_s26 }
  0x2b   :  { %268 = vmatprep.subr.bf16.mxu0 %v360_v0  ;;  %v53_v16 = vmul.f32 %v52_v15, %v51_v14 }
  0x2c   :  { %273 = vmatpush3.bf16.msra.mxu1 %v272_v11  ;;  %p335_p5 = por %p334_p4, %p333_p3 }
  0x2d   :  { %260 = vmatprep.subr.mxu1 %v362_v1  ;;  %v54_v19 = vadd.f32 %v53_v16, %v50_v18 }
  0x2e   :  { %270 = vmatpush3.bf16.msra.mxu0 %v269_v7  ;;  %p336_p6 = pnand %p335_p5, %p329_p2 }
  0x2f   :  { %v63_v21 = vrot.slane %v54_v19, %v62_v20 }
  0x30   :  { %261 = vmatpush3.msra.mxu1 %v141_v12 }
  0x31   :  { %254 = vmatmul.mubr.msk.f32.vlgmr.msra.gmra.mrb[0].mxu0 %vm64_vm1, %v55_v8 }
 0x104   :  { %v134_v22 = vpop.f32.mrb[0].mxu0 }
 0x105   :  { %v135_v23 = vadd.f32 %v134_v22, %v63_v21  ;;  %v255_v24 = vpop.f32.mrb[1].mxu0 }
 0x107   :  { %282 = vtanh.f32 %v135_v23 }
 0x111   :  { %v283_v25 = vpop.eup %282 }
 0x112   :  { %263 = vmatmul.mubr.msk.f32.vlgmr.msra.gmra.mrb[0].mxu1 %vm142_vm2, %v283_v25 }
 0x1e5   :  { %v212_v26 = vpop.f32.mrb[0].mxu1 }
 0x1e6   :  { %v264_v27 = vpop.f32.mrb[1].mxu1  ;;  %217 = vst.msk [vmem:[#allocation9] sm:$0x3] %vm216_vm3, %v212_v26 }
 0x1e7   :  { %339 = shalt.err (!%p336_p6)
}
 0x1e8   :  { %s340_s28 = scalar_lea.hbm %s447_s5, 32 }
 0x1e9   :  { %p341_p7 = scmp.ne.s32.totalorder %s447_s5, %s340_s28  ;;  %p344_p8 = scmp.lt.u32.totalorder %s340_s28, %s447_s5 }
 0x1eb   :  { %p346_p9 = pnand %p344_p8, %p341_p7 }
 0x1ed   :  { %349 = shalt.err (!%p346_p9)
}
 0x1ee   :  { %227 = dma.vmem_to_hbm [thread:$0]  %s225_s25, 32, %s447_s5, [#allocation6]  }
 0x1ef   :  { %354 = dma.done.wait [#allocation6], 32  }
 0x1f0   :  { %355 = vsyncadd [#allocation6], 4294967264 }
 0x1f1   :  { %231 = vsyncpa [#allocation5], 1 }
 0x1f2   :  { %232 = vsyncpa [#allocation8], 1 }
 0x1f3   :  { %233 = vsyncpa [#allocation6], 1 }

</bundles_post_ra>
